<compile_context>
chip_gen: v6e
topology: v6e:2x2x1
jax: 0.10.0
libtpu: 0.0.40
codegen_flags: <defaults>
</compile_context>

<pallas_src>
import functools

import jax
import jax.numpy as jnp
from jax import lax
from jax.experimental import pallas as pl
from jax.experimental.pallas import tpu as pltpu

B, N, H, W_IMG = 2, 4, 16, 16     # batch, world variables (digit images), image size
K = 8                             # classes per world variable (power of 2)
S = 4                             # amount_samples for the RLOO estimator
DIN = H * W_IMG                   # flattened image size


def _as_i32(v):
    """Hex constant -> signed int32 Python literal (weak-typed in jnp ops)."""
    return v - (1 << 32) if v >= (1 << 31) else v


_C1 = _as_i32(0x9E3779B9)   # golden-ratio stride
_C2 = _as_i32(0x7FEB352D)   # lowbias32 finalizer constants
_C3 = _as_i32(0x846CA68B)


def _fused_rloo_kernel(seed_ref, y_ref, x_ref, w_ref, b_ref,
                       p_ref, stats_ref,
                       *, n_cls, n_samples, n_vars, n_batch):
    """Fused perception + Gumbel-max sampling + symbolic fn + RLOO estimator.

    seed_ref: (1,) int32 SMEM          y_ref: (B*N,) int32 SMEM (labels, b-major)
    x_ref: (N*B, DIN) bf16 (rows = n*B + b)     w_ref: (DIN, K) bf16
    b_ref: (1, K) f32
    p_ref: (N*B, K) f32                stats_ref: (1, 2) f32  -> [norm_loss, surrogate]
    """
    sb = n_samples * n_batch          # (s, b) groups; row index = s*B + b

    # ---- perception: bf16 MXU matmul, f32 softmax on VPU/EUP ---------------------
    logits = jnp.dot(x_ref[...], w_ref[...], preferred_element_type=jnp.float32)
    logits = logits + b_ref[...]                                  # (N*B, K)
    m = jnp.max(logits, axis=-1, keepdims=True)
    z = logits - m
    e = jnp.exp(z)
    denom = jnp.sum(e, axis=-1, keepdims=True)
    p_ref[...] = e / denom                                        # P (returned)
    logp = z - jnp.log(denom)                                     # log P, (N*B, K)

    # ---- in-kernel counter-based PRNG (int32 hash) -> Gumbel noise ----------------
    # Pure VPU integer ops: lowers on Mosaic and in interpret mode (no pltpu.prng_*).
    rows = n_vars * sb                                            # one row per (n, s, b)
    r_io = lax.broadcasted_iota(jnp.int32, (rows, n_cls), 0)
    c_io = lax.broadcasted_iota(jnp.int32, (rows, n_cls), 1)
    h = (r_io * n_cls + c_io) * _C1 + seed_ref[0]
    h = h ^ ((h >> 16) & 0xFFFF)          # arithmetic shift + mask == logical shift
    h = h * _C2
    h = h ^ ((h >> 15) & 0x1FFFF)
    h = h * _C3
    h = h ^ ((h >> 16) & 0xFFFF)
    u = ((h & 0x7FFFFF).astype(jnp.float32) + 0.5) * jnp.float32(1.0 / (1 << 23))
    gumbel = -jnp.log(-jnp.log(u))                                # (N*S*B, K), u in (0,1)

    k_io = lax.broadcasted_iota(jnp.int32, (sb, n_cls), 1)        # class index per lane
    # batch id of each (s,b) row: row % B (B is a power of two)
    b_idx = jnp.bitwise_and(lax.broadcasted_iota(jnp.int32, (sb, 1), 0), n_batch - 1)

    # ---- pass 1 over world vars: Gumbel-max sample, accumulate log q and sum_n w ---
    # Group (s,b) sums over the N world vars are loop-carried adds -> no MXU, no
    # segment reductions.  All tiles are (S*B, K) = (8, 8) or (S*B, 1).
    logprob_sb = jnp.zeros((sb, 1), jnp.float32)                  # sum_n log P(w_n)
    total_sb = jnp.zeros((sb, 1), jnp.int32)                      # sum_n w_n
    w_per_var = []
    for n in range(n_vars):
        logp_n = logp[n * n_batch:(n + 1) * n_batch, :]           # (B, K) for world var n
        logp_sbn = jnp.concatenate([logp_n] * n_samples, axis=0)  # (S*B, K), row = s*B+b
        zz = logp_sbn + gumbel[n * sb:(n + 1) * sb, :]
        zmax = jnp.max(zz, axis=-1, keepdims=True)
        w_n = jnp.min(jnp.where(zz >= zmax, k_io, n_cls),         # first argmax, int32
                      axis=-1, keepdims=True)                     # (S*B, 1)
        w_per_var.append(w_n)
        total_sb = total_sb + w_n
        logprob_sb = logprob_sb + jnp.sum(
            jnp.where(k_io == w_n, logp_sbn, 0.0), axis=-1, keepdims=True)

    # ---- pass 2: symbolic program + hamming cost -----------------------------------
    # TODO(synk): ANeSI's symbolic_function / preprocess_y are task specific (e.g.
    # multi-digit addition); a synthetic deterministic program stands in:
    #   y_pred[n] = (w[n] + sum_n' w[n']) mod K     (integer math, K power of 2)
    ham_sb = jnp.zeros((sb, 1), jnp.float32)
    for n in range(n_vars):
        y_pred_n = jnp.bitwise_and(w_per_var[n] + total_sb, n_cls - 1)   # (S*B, 1) int32
        y_n = jnp.zeros((sb, 1), jnp.int32)
        for bb in range(n_batch):                                 # labels from SMEM scalars
            y_n = jnp.where(b_idx == bb, y_ref[bb * n_vars + n], y_n)
        ham_sb = ham_sb + (y_pred_n != y_n).astype(jnp.float32)
    ham_sb = ham_sb * jnp.float32(1.0 / n_vars)                   # hamming cost per (s, b)

    # ---- RLOO: leave-one-out ("batch_average") baseline over the S samples ---------
    tot_b = ham_sb[0:n_batch, :]                                  # sum_s cost, per b
    for s in range(1, n_samples):
        tot_b = tot_b + ham_sb[s * n_batch:(s + 1) * n_batch, :]
    tot_sb = jnp.concatenate([tot_b] * n_samples, axis=0)         # broadcast back to (S*B,1)
    baseline = (tot_sb - ham_sb) * jnp.float32(1.0 / (n_samples - 1))
    advantage = ham_sb - baseline

    loss = jnp.mean(ham_sb, axis=0, keepdims=True)                # (1,1) norm_loss
    surr = jnp.mean(advantage * logprob_sb, axis=0, keepdims=True)  # (1,1) surrogate
    stats_ref[...] = jnp.concatenate([loss, surr], axis=1)        # single packed store


def rloo_forward(x, y, w, b, seed, amount_samples=S):
    """Forward pass of RLOOWrapper. Returns (norm_loss, surrogate, P).

    norm_loss matches the value returned by the PyTorch forward; surrogate is the
    RLOO score-function loss whose gradient the optimizer would use.
    """
    assert amount_samples >= 2, "RLOO leave-one-out baseline requires amount_samples >= 2"
    assert (K & (K - 1)) == 0 and (B & (B - 1)) == 0, "kernel assumes K, B are powers of 2"

    # rows ordered (n, b) so each world variable is one contiguous 2-row slice in-kernel
    x_nb = (x.reshape(B, N, DIN).transpose(1, 0, 2)
            .reshape(N * B, DIN).astype(jnp.bfloat16))
    y_flat = y.reshape(B * N).astype(jnp.int32)                   # SMEM labels, no tiling
    seed_arr = jnp.asarray(seed, dtype=jnp.int32).reshape((1,))

    kernel = functools.partial(_fused_rloo_kernel, n_cls=K, n_samples=amount_samples,
                               n_vars=N, n_batch=B)

    p_nb, stats = pl.pallas_call(
        kernel,
        out_shape=(
            jax.ShapeDtypeStruct((N * B, K), jnp.float32),        # P
            jax.ShapeDtypeStruct((1, 2), jnp.float32),            # [norm_loss, surrogate]
        ),
        in_specs=[
            pl.BlockSpec(memory_space=pltpu.MemorySpace.SMEM),    # seed scalar
            pl.BlockSpec(memory_space=pltpu.MemorySpace.SMEM),    # labels (B*N,)
            pl.BlockSpec(memory_space=pltpu.MemorySpace.VMEM),    # x (N*B, DIN) bf16
            pl.BlockSpec(memory_space=pltpu.MemorySpace.VMEM),    # W (DIN, K) bf16
            pl.BlockSpec(memory_space=pltpu.MemorySpace.VMEM),    # bias (1, K) f32
        ],
        out_specs=(
            pl.BlockSpec(memory_space=pltpu.MemorySpace.VMEM),
            pl.BlockSpec(memory_space=pltpu.MemorySpace.VMEM),
        ),
    )(seed_arr, y_flat, x_nb, w.astype(jnp.bfloat16), b)

    # TODO(synk): optimizer.zero_grad()/storch.backward()/Adam step are a training
    # update, not a forward computation; only the forward value (norm_loss) and the
    # RLOO surrogate are produced here.
    P = p_nb.reshape(N, B, K).transpose(1, 0, 2)                  # back to (B, N, K)
    return stats[0, 0], stats[0, 1], P


if __name__ == "__main__":
    key = jax.random.PRNGKey(0)
    kx, ky, kw, kb, ks = jax.random.split(key, 5)

    x = jax.random.normal(kx, (B, N, H, W_IMG), dtype=jnp.float32)      # NCHW-style input
    y = jax.random.randint(ky, (B, N), 0, K)                            # structured labels

    # deterministic perception parameters (single linear layer DIN -> K)
    w = jax.random.normal(kw, (DIN, K), dtype=jnp.float32) * (1.0 / jnp.sqrt(DIN))
    b = jax.random.normal(kb, (1, K), dtype=jnp.float32) * 0.01

    seed = jax.random.randint(ks, (1,), 0, jnp.iinfo(jnp.int32).max, dtype=jnp.int32)

    norm_loss, surrogate, P = rloo_forward(x, y, w, b, seed)
    jax.block_until_ready((norm_loss, surrogate, P))
    print("KERNEL_OK")
</pallas_src>

<mosaic_0001>
module attributes {stable_mosaic.version = 11 : i64} {
  func.func @_fused_rloo_kernel(%arg0: memref<1xi32, #tpu.memory_space<smem>>, %arg1: memref<8xi32, #tpu.memory_space<smem>>, %arg2: memref<8x256xbf16, #tpu.memory_space<vmem>>, %arg3: memref<256x8xbf16, #tpu.memory_space<vmem>>, %arg4: memref<1x8xf32, #tpu.memory_space<vmem>>, %arg5: memref<8x8xf32, #tpu.memory_space<vmem>>, %arg6: memref<1x2xf32, #tpu.memory_space<vmem>>) attributes {dimension_semantics = [], scalar_prefetch = 0 : i64, scratch_operands = 0 : i64, tpu.core_type = #tpu.core_type<tc>} {
    %c0 = arith.constant 0 : index
    %c0_0 = arith.constant 0 : index
    %0 = vector.load %arg2[%c0, %c0_0] : memref<8x256xbf16, #tpu.memory_space<vmem>>, vector<8x256xbf16>
    %c0_1 = arith.constant 0 : index
    %c0_2 = arith.constant 0 : index
    %1 = vector.load %arg3[%c0_1, %c0_2] : memref<256x8xbf16, #tpu.memory_space<vmem>>, vector<256x8xbf16>
    %cst = arith.constant dense<0.000000e+00> : vector<8x8xf32>
    %2 = tpu.matmul %0, %1, %cst {dimension_numbers = #tpu.dot_dimension_numbers<[1], [0], [0], [1], [0, 0, 1, 1], [], []>} : vector<8x256xbf16>, vector<256x8xbf16>, vector<8x8xf32> -> vector<8x8xf32>
    %c0_3 = arith.constant 0 : index
    %c0_4 = arith.constant 0 : index
    %3 = vector.load %arg4[%c0_3, %c0_4] : memref<1x8xf32, #tpu.memory_space<vmem>>, vector<1x8xf32>
    %4 = vector.broadcast %3 : vector<1x8xf32> to vector<8x8xf32>
    %5 = arith.addf %2, %4 : vector<8x8xf32>
    %cst_5 = arith.constant dense<0xFF800000> : vector<8xf32>
    %6 = vector.multi_reduction <maximumf>, %5, %cst_5 [1] : vector<8x8xf32> to vector<8xf32>
    %7 = vector.shape_cast %6 : vector<8xf32> to vector<8x1xf32>
    %8 = vector.broadcast %7 : vector<8x1xf32> to vector<8x8xf32>
    %9 = arith.subf %5, %8 : vector<8x8xf32>
    %10 = math.exp %9 : vector<8x8xf32>
    %cst_6 = arith.constant dense<0.000000e+00> : vector<8xf32>
    %11 = vector.multi_reduction <add>, %10, %cst_6 [1] : vector<8x8xf32> to vector<8xf32>
    %12 = vector.shape_cast %11 : vector<8xf32> to vector<8x1xf32>
    %13 = vector.broadcast %12 : vector<8x1xf32> to vector<8x8xf32>
    %14 = arith.divf %10, %13 : vector<8x8xf32>
    %c0_7 = arith.constant 0 : index
    %c0_8 = arith.constant 0 : index
    %15 = vector.load %arg5[%c0_7, %c0_8] : memref<8x8xf32, #tpu.memory_space<vmem>>, vector<8x8xf32>
    tpu.vector_store %arg5[%c0_7, %c0_8], %14 {strides = array<i32>} : memref<8x8xf32, #tpu.memory_space<vmem>>, vector<8x8xf32>,
    %16 = math.log %12 : vector<8x1xf32>
    %17 = vector.broadcast %16 : vector<8x1xf32> to vector<8x8xf32>
    %18 = arith.subf %9, %17 : vector<8x8xf32>
    %19 = tpu.iota {dimensions = array<i32: 0>} : vector<32x8xi32>
    %20 = tpu.iota {dimensions = array<i32: 1>} : vector<32x8xi32>
    %c8_i32 = arith.constant 8 : i32
    %21 = vector.broadcast %c8_i32 : i32 to vector<32x8xi32>
    %22 = arith.muli %19, %21 : vector<32x8xi32>
    %23 = arith.addi %22, %20 : vector<32x8xi32>
    %c-1640531527_i32 = arith.constant -1640531527 : i32
    %24 = vector.broadcast %c-1640531527_i32 : i32 to vector<32x8xi32>
    %25 = arith.muli %23, %24 : vector<32x8xi32>
    %c0_9 = arith.constant 0 : index
    %26 = memref.load %arg0[%c0_9] : memref<1xi32, #tpu.memory_space<smem>>
    %27 = vector.broadcast %26 : i32 to vector<32x8xi32>
    %28 = arith.addi %25, %27 : vector<32x8xi32>
    %c16_i32 = arith.constant 16 : i32
    %29 = vector.broadcast %c16_i32 : i32 to vector<32x8xi32>
    %30 = arith.shrsi %28, %29 : vector<32x8xi32>
    %c65535_i32 = arith.constant 65535 : i32
    %31 = vector.broadcast %c65535_i32 : i32 to vector<32x8xi32>
    %32 = arith.andi %30, %31 : vector<32x8xi32>
    %33 = arith.xori %28, %32 : vector<32x8xi32>
    %c2146121005_i32 = arith.constant 2146121005 : i32
    %34 = vector.broadcast %c2146121005_i32 : i32 to vector<32x8xi32>
    %35 = arith.muli %33, %34 : vector<32x8xi32>
    %c15_i32 = arith.constant 15 : i32
    %36 = vector.broadcast %c15_i32 : i32 to vector<32x8xi32>
    %37 = arith.shrsi %35, %36 : vector<32x8xi32>
    %c131071_i32 = arith.constant 131071 : i32
    %38 = vector.broadcast %c131071_i32 : i32 to vector<32x8xi32>
    %39 = arith.andi %37, %38 : vector<32x8xi32>
    %40 = arith.xori %35, %39 : vector<32x8xi32>
    %c-2073254261_i32 = arith.constant -2073254261 : i32
    %41 = vector.broadcast %c-2073254261_i32 : i32 to vector<32x8xi32>
    %42 = arith.muli %40, %41 : vector<32x8xi32>
    %c16_i32_10 = arith.constant 16 : i32
    %43 = vector.broadcast %c16_i32_10 : i32 to vector<32x8xi32>
    %44 = arith.shrsi %42, %43 : vector<32x8xi32>
    %c65535_i32_11 = arith.constant 65535 : i32
    %45 = vector.broadcast %c65535_i32_11 : i32 to vector<32x8xi32>
    %46 = arith.andi %44, %45 : vector<32x8xi32>
    %47 = arith.xori %42, %46 : vector<32x8xi32>
    %c8388607_i32 = arith.constant 8388607 : i32
    %48 = vector.broadcast %c8388607_i32 : i32 to vector<32x8xi32>
    %49 = arith.andi %47, %48 : vector<32x8xi32>
    %50 = arith.sitofp %49 : vector<32x8xi32> to vector<32x8xf32>
    %cst_12 = arith.constant 5.000000e-01 : f32
    %51 = vector.broadcast %cst_12 : f32 to vector<32x8xf32>
    %52 = arith.addf %50, %51 : vector<32x8xf32>
    %cst_13 = arith.constant 1.1920929E-7 : f32
    %53 = vector.broadcast %cst_13 : f32 to vector<32x8xf32>
    %54 = arith.mulf %52, %53 : vector<32x8xf32>
    %55 = math.log %54 : vector<32x8xf32>
    %cst_14 = arith.constant 0.000000e+00 : f32
    %56 = vector.broadcast %cst_14 : f32 to vector<32x8xf32>
    %57 = arith.subf %56, %55 : vector<32x8xf32>
    %58 = math.log %57 : vector<32x8xf32>
    %cst_15 = arith.constant 0.000000e+00 : f32
    %59 = vector.broadcast %cst_15 : f32 to vector<32x8xf32>
    %60 = arith.subf %59, %58 : vector<32x8xf32>
    %61 = tpu.iota {dimensions = array<i32: 1>} : vector<8x8xi32>
    %62 = tpu.iota {dimensions = array<i32: 0>} : vector<8x1xi32>
    %c1_i32 = arith.constant 1 : i32
    %63 = vector.broadcast %c1_i32 : i32 to vector<8x1xi32>
    %64 = arith.andi %62, %63 : vector<8x1xi32>
    %cst_16 = arith.constant 0.000000e+00 : f32
    %65 = vector.broadcast %cst_16 : f32 to vector<8x1xf32>
    %c0_i32 = arith.constant 0 : i32
    %66 = vector.broadcast %c0_i32 : i32 to vector<8x1xi32>
    %67 = vector.extract_strided_slice %18 {offsets = [0, 0], sizes = [2, 8], strides = [1, 1]} : vector<8x8xf32> to vector<2x8xf32>
    %68 = tpu.concatenate %67, %67, %67, %67 in 0 : vector<2x8xf32>, vector<2x8xf32>, vector<2x8xf32>, vector<2x8xf32> -> vector<8x8xf32>
    %69 = vector.extract_strided_slice %60 {offsets = [0, 0], sizes = [8, 8], strides = [1, 1]} : vector<32x8xf32> to vector<8x8xf32>
    %70 = arith.addf %68, %69 : vector<8x8xf32>
    %cst_17 = arith.constant dense<0xFF800000> : vector<8xf32>
    %71 = vector.multi_reduction <maximumf>, %70, %cst_17 [1] : vector<8x8xf32> to vector<8xf32>
    %72 = vector.shape_cast %71 : vector<8xf32> to vector<8x1xf32>
    %73 = vector.broadcast %72 : vector<8x1xf32> to vector<8x8xf32>
    %74 = arith.cmpf oge, %70, %73 : vector<8x8xf32>
    %c8_i32_18 = arith.constant 8 : i32
    %75 = vector.broadcast %c8_i32_18 : i32 to vector<8x8xi32>
    %76 = arith.select %74, %61, %75 : vector<8x8xi1>, vector<8x8xi32>
    %cst_19 = arith.constant dense<2147483647> : vector<8xi32>
    %77 = vector.multi_reduction <minsi>, %76, %cst_19 [1] : vector<8x8xi32> to vector<8xi32>
    %78 = vector.shape_cast %77 : vector<8xi32> to vector<8x1xi32>
    %79 = arith.addi %66, %78 : vector<8x1xi32>
    %80 = vector.broadcast %78 : vector<8x1xi32> to vector<8x8xi32>
    %81 = arith.cmpi eq, %61, %80 : vector<8x8xi32>
    %cst_20 = arith.constant 0.000000e+00 : f32
    %82 = vector.broadcast %cst_20 : f32 to vector<8x8xf32>
    %83 = arith.select %81, %68, %82 : vector<8x8xi1>, vector<8x8xf32>
    %cst_21 = arith.constant dense<0.000000e+00> : vector<8xf32>
    %84 = vector.multi_reduction <add>, %83, %cst_21 [1] : vector<8x8xf32> to vector<8xf32>
    %85 = vector.shape_cast %84 : vector<8xf32> to vector<8x1xf32>
    %86 = arith.addf %65, %85 : vector<8x1xf32>
    %87 = vector.extract_strided_slice %18 {offsets = [2, 0], sizes = [2, 8], strides = [1, 1]} : vector<8x8xf32> to vector<2x8xf32>
    %88 = tpu.concatenate %87, %87, %87, %87 in 0 : vector<2x8xf32>, vector<2x8xf32>, vector<2x8xf32>, vector<2x8xf32> -> vector<8x8xf32>
    %89 = vector.extract_strided_slice %60 {offsets = [8, 0], sizes = [8, 8], strides = [1, 1]} : vector<32x8xf32> to vector<8x8xf32>
    %90 = arith.addf %88, %89 : vector<8x8xf32>
    %cst_22 = arith.constant dense<0xFF800000> : vector<8xf32>
    %91 = vector.multi_reduction <maximumf>, %90, %cst_22 [1] : vector<8x8xf32> to vector<8xf32>
    %92 = vector.shape_cast %91 : vector<8xf32> to vector<8x1xf32>
    %93 = vector.broadcast %92 : vector<8x1xf32> to vector<8x8xf32>
    %94 = arith.cmpf oge, %90, %93 : vector<8x8xf32>
    %c8_i32_23 = arith.constant 8 : i32
    %95 = vector.broadcast %c8_i32_23 : i32 to vector<8x8xi32>
    %96 = arith.select %94, %61, %95 : vector<8x8xi1>, vector<8x8xi32>
    %cst_24 = arith.constant dense<2147483647> : vector<8xi32>
    %97 = vector.multi_reduction <minsi>, %96, %cst_24 [1] : vector<8x8xi32> to vector<8xi32>
    %98 = vector.shape_cast %97 : vector<8xi32> to vector<8x1xi32>
    %99 = arith.addi %79, %98 : vector<8x1xi32>
    %100 = vector.broadcast %98 : vector<8x1xi32> to vector<8x8xi32>
    %101 = arith.cmpi eq, %61, %100 : vector<8x8xi32>
    %cst_25 = arith.constant 0.000000e+00 : f32
    %102 = vector.broadcast %cst_25 : f32 to vector<8x8xf32>
    %103 = arith.select %101, %88, %102 : vector<8x8xi1>, vector<8x8xf32>
    %cst_26 = arith.constant dense<0.000000e+00> : vector<8xf32>
    %104 = vector.multi_reduction <add>, %103, %cst_26 [1] : vector<8x8xf32> to vector<8xf32>
    %105 = vector.shape_cast %104 : vector<8xf32> to vector<8x1xf32>
    %106 = arith.addf %86, %105 : vector<8x1xf32>
    %107 = vector.extract_strided_slice %18 {offsets = [4, 0], sizes = [2, 8], strides = [1, 1]} : vector<8x8xf32> to vector<2x8xf32>
    %108 = tpu.concatenate %107, %107, %107, %107 in 0 : vector<2x8xf32>, vector<2x8xf32>, vector<2x8xf32>, vector<2x8xf32> -> vector<8x8xf32>
    %109 = vector.extract_strided_slice %60 {offsets = [16, 0], sizes = [8, 8], strides = [1, 1]} : vector<32x8xf32> to vector<8x8xf32>
    %110 = arith.addf %108, %109 : vector<8x8xf32>
    %cst_27 = arith.constant dense<0xFF800000> : vector<8xf32>
    %111 = vector.multi_reduction <maximumf>, %110, %cst_27 [1] : vector<8x8xf32> to vector<8xf32>
    %112 = vector.shape_cast %111 : vector<8xf32> to vector<8x1xf32>
    %113 = vector.broadcast %112 : vector<8x1xf32> to vector<8x8xf32>
    %114 = arith.cmpf oge, %110, %113 : vector<8x8xf32>
    %c8_i32_28 = arith.constant 8 : i32
    %115 = vector.broadcast %c8_i32_28 : i32 to vector<8x8xi32>
    %116 = arith.select %114, %61, %115 : vector<8x8xi1>, vector<8x8xi32>
    %cst_29 = arith.constant dense<2147483647> : vector<8xi32>
    %117 = vector.multi_reduction <minsi>, %116, %cst_29 [1] : vector<8x8xi32> to vector<8xi32>
    %118 = vector.shape_cast %117 : vector<8xi32> to vector<8x1xi32>
    %119 = arith.addi %99, %118 : vector<8x1xi32>
    %120 = vector.broadcast %118 : vector<8x1xi32> to vector<8x8xi32>
    %121 = arith.cmpi eq, %61, %120 : vector<8x8xi32>
    %cst_30 = arith.constant 0.000000e+00 : f32
    %122 = vector.broadcast %cst_30 : f32 to vector<8x8xf32>
    %123 = arith.select %121, %108, %122 : vector<8x8xi1>, vector<8x8xf32>
    %cst_31 = arith.constant dense<0.000000e+00> : vector<8xf32>
    %124 = vector.multi_reduction <add>, %123, %cst_31 [1] : vector<8x8xf32> to vector<8xf32>
    %125 = vector.shape_cast %124 : vector<8xf32> to vector<8x1xf32>
    %126 = arith.addf %106, %125 : vector<8x1xf32>
    %127 = vector.extract_strided_slice %18 {offsets = [6, 0], sizes = [2, 8], strides = [1, 1]} : vector<8x8xf32> to vector<2x8xf32>
    %128 = tpu.concatenate %127, %127, %127, %127 in 0 : vector<2x8xf32>, vector<2x8xf32>, vector<2x8xf32>, vector<2x8xf32> -> vector<8x8xf32>
    %129 = vector.extract_strided_slice %60 {offsets = [24, 0], sizes = [8, 8], strides = [1, 1]} : vector<32x8xf32> to vector<8x8xf32>
    %130 = arith.addf %128, %129 : vector<8x8xf32>
    %cst_32 = arith.constant dense<0xFF800000> : vector<8xf32>
    %131 = vector.multi_reduction <maximumf>, %130, %cst_32 [1] : vector<8x8xf32> to vector<8xf32>
    %132 = vector.shape_cast %131 : vector<8xf32> to vector<8x1xf32>
    %133 = vector.broadcast %132 : vector<8x1xf32> to vector<8x8xf32>
    %134 = arith.cmpf oge, %130, %133 : vector<8x8xf32>
    %c8_i32_33 = arith.constant 8 : i32
    %135 = vector.broadcast %c8_i32_33 : i32 to vector<8x8xi32>
    %136 = arith.select %134, %61, %135 : vector<8x8xi1>, vector<8x8xi32>
    %cst_34 = arith.constant dense<2147483647> : vector<8xi32>
    %137 = vector.multi_reduction <minsi>, %136, %cst_34 [1] : vector<8x8xi32> to vector<8xi32>
    %138 = vector.shape_cast %137 : vector<8xi32> to vector<8x1xi32>
    %139 = arith.addi %119, %138 : vector<8x1xi32>
    %140 = vector.broadcast %138 : vector<8x1xi32> to vector<8x8xi32>
    %141 = arith.cmpi eq, %61, %140 : vector<8x8xi32>
    %cst_35 = arith.constant 0.000000e+00 : f32
    %142 = vector.broadcast %cst_35 : f32 to vector<8x8xf32>
    %143 = arith.select %141, %128, %142 : vector<8x8xi1>, vector<8x8xf32>
    %cst_36 = arith.constant dense<0.000000e+00> : vector<8xf32>
    %144 = vector.multi_reduction <add>, %143, %cst_36 [1] : vector<8x8xf32> to vector<8xf32>
    %145 = vector.shape_cast %144 : vector<8xf32> to vector<8x1xf32>
    %146 = arith.addf %126, %145 : vector<8x1xf32>
    %cst_37 = arith.constant 0.000000e+00 : f32
    %147 = vector.broadcast %cst_37 : f32 to vector<8x1xf32>
    %148 = arith.addi %78, %139 : vector<8x1xi32>
    %c7_i32 = arith.constant 7 : i32
    %149 = vector.broadcast %c7_i32 : i32 to vector<8x1xi32>
    %150 = arith.andi %148, %149 : vector<8x1xi32>
    %c0_i32_38 = arith.constant 0 : i32
    %151 = vector.broadcast %c0_i32_38 : i32 to vector<8x1xi32>
    %c0_i32_39 = arith.constant 0 : i32
    %152 = vector.broadcast %c0_i32_39 : i32 to vector<8x1xi32>
    %153 = arith.cmpi eq, %64, %152 : vector<8x1xi32>
    %c0_40 = arith.constant 0 : index
    %154 = memref.load %arg1[%c0_40] : memref<8xi32, #tpu.memory_space<smem>>
    %155 = vector.broadcast %154 : i32 to vector<8x1xi32>
    %156 = arith.select %153, %155, %151 : vector<8x1xi1>, vector<8x1xi32>
    %c1_i32_41 = arith.constant 1 : i32
    %157 = vector.broadcast %c1_i32_41 : i32 to vector<8x1xi32>
    %158 = arith.cmpi eq, %64, %157 : vector<8x1xi32>
    %c4 = arith.constant 4 : index
    %159 = memref.load %arg1[%c4] : memref<8xi32, #tpu.memory_space<smem>>
    %160 = vector.broadcast %159 : i32 to vector<8x1xi32>
    %161 = arith.select %158, %160, %156 : vector<8x1xi1>, vector<8x1xi32>
    %162 = arith.cmpi ne, %150, %161 : vector<8x1xi32>
    %163 = arith.extui %162 : vector<8x1xi1> to vector<8x1xi32>
    %164 = arith.sitofp %163 : vector<8x1xi32> to vector<8x1xf32>
    %165 = arith.addf %147, %164 : vector<8x1xf32>
    %166 = arith.addi %98, %139 : vector<8x1xi32>
    %c7_i32_42 = arith.constant 7 : i32
    %167 = vector.broadcast %c7_i32_42 : i32 to vector<8x1xi32>
    %168 = arith.andi %166, %167 : vector<8x1xi32>
    %c0_i32_43 = arith.constant 0 : i32
    %169 = vector.broadcast %c0_i32_43 : i32 to vector<8x1xi32>
    %c0_i32_44 = arith.constant 0 : i32
    %170 = vector.broadcast %c0_i32_44 : i32 to vector<8x1xi32>
    %171 = arith.cmpi eq, %64, %170 : vector<8x1xi32>
    %c1 = arith.constant 1 : index
    %172 = memref.load %arg1[%c1] : memref<8xi32, #tpu.memory_space<smem>>
    %173 = vector.broadcast %172 : i32 to vector<8x1xi32>
    %174 = arith.select %171, %173, %169 : vector<8x1xi1>, vector<8x1xi32>
    %c1_i32_45 = arith.constant 1 : i32
    %175 = vector.broadcast %c1_i32_45 : i32 to vector<8x1xi32>
    %176 = arith.cmpi eq, %64, %175 : vector<8x1xi32>
    %c5 = arith.constant 5 : index
    %177 = memref.load %arg1[%c5] : memref<8xi32, #tpu.memory_space<smem>>
    %178 = vector.broadcast %177 : i32 to vector<8x1xi32>
    %179 = arith.select %176, %178, %174 : vector<8x1xi1>, vector<8x1xi32>
    %180 = arith.cmpi ne, %168, %179 : vector<8x1xi32>
    %181 = arith.extui %180 : vector<8x1xi1> to vector<8x1xi32>
    %182 = arith.sitofp %181 : vector<8x1xi32> to vector<8x1xf32>
    %183 = arith.addf %165, %182 : vector<8x1xf32>
    %184 = arith.addi %118, %139 : vector<8x1xi32>
    %c7_i32_46 = arith.constant 7 : i32
    %185 = vector.broadcast %c7_i32_46 : i32 to vector<8x1xi32>
    %186 = arith.andi %184, %185 : vector<8x1xi32>
    %c0_i32_47 = arith.constant 0 : i32
    %187 = vector.broadcast %c0_i32_47 : i32 to vector<8x1xi32>
    %c0_i32_48 = arith.constant 0 : i32
    %188 = vector.broadcast %c0_i32_48 : i32 to vector<8x1xi32>
    %189 = arith.cmpi eq, %64, %188 : vector<8x1xi32>
    %c2 = arith.constant 2 : index
    %190 = memref.load %arg1[%c2] : memref<8xi32, #tpu.memory_space<smem>>
    %191 = vector.broadcast %190 : i32 to vector<8x1xi32>
    %192 = arith.select %189, %191, %187 : vector<8x1xi1>, vector<8x1xi32>
    %c1_i32_49 = arith.constant 1 : i32
    %193 = vector.broadcast %c1_i32_49 : i32 to vector<8x1xi32>
    %194 = arith.cmpi eq, %64, %193 : vector<8x1xi32>
    %c6 = arith.constant 6 : index
    %195 = memref.load %arg1[%c6] : memref<8xi32, #tpu.memory_space<smem>>
    %196 = vector.broadcast %195 : i32 to vector<8x1xi32>
    %197 = arith.select %194, %196, %192 : vector<8x1xi1>, vector<8x1xi32>
    %198 = arith.cmpi ne, %186, %197 : vector<8x1xi32>
    %199 = arith.extui %198 : vector<8x1xi1> to vector<8x1xi32>
    %200 = arith.sitofp %199 : vector<8x1xi32> to vector<8x1xf32>
    %201 = arith.addf %183, %200 : vector<8x1xf32>
    %202 = arith.addi %138, %139 : vector<8x1xi32>
    %c7_i32_50 = arith.constant 7 : i32
    %203 = vector.broadcast %c7_i32_50 : i32 to vector<8x1xi32>
    %204 = arith.andi %202, %203 : vector<8x1xi32>
    %c0_i32_51 = arith.constant 0 : i32
    %205 = vector.broadcast %c0_i32_51 : i32 to vector<8x1xi32>
    %c0_i32_52 = arith.constant 0 : i32
    %206 = vector.broadcast %c0_i32_52 : i32 to vector<8x1xi32>
    %207 = arith.cmpi eq, %64, %206 : vector<8x1xi32>
    %c3 = arith.constant 3 : index
    %208 = memref.load %arg1[%c3] : memref<8xi32, #tpu.memory_space<smem>>
    %209 = vector.broadcast %208 : i32 to vector<8x1xi32>
    %210 = arith.select %207, %209, %205 : vector<8x1xi1>, vector<8x1xi32>
    %c1_i32_53 = arith.constant 1 : i32
    %211 = vector.broadcast %c1_i32_53 : i32 to vector<8x1xi32>
    %212 = arith.cmpi eq, %64, %211 : vector<8x1xi32>
    %c7 = arith.constant 7 : index
    %213 = memref.load %arg1[%c7] : memref<8xi32, #tpu.memory_space<smem>>
    %214 = vector.broadcast %213 : i32 to vector<8x1xi32>
    %215 = arith.select %212, %214, %210 : vector<8x1xi1>, vector<8x1xi32>
    %216 = arith.cmpi ne, %204, %215 : vector<8x1xi32>
    %217 = arith.extui %216 : vector<8x1xi1> to vector<8x1xi32>
    %218 = arith.sitofp %217 : vector<8x1xi32> to vector<8x1xf32>
    %219 = arith.addf %201, %218 : vector<8x1xf32>
    %cst_54 = arith.constant 2.500000e-01 : f32
    %220 = vector.broadcast %cst_54 : f32 to vector<8x1xf32>
    %221 = arith.mulf %219, %220 : vector<8x1xf32>
    %222 = vector.extract_strided_slice %221 {offsets = [0, 0], sizes = [2, 1], strides = [1, 1]} : vector<8x1xf32> to vector<2x1xf32>
    %223 = vector.extract_strided_slice %221 {offsets = [2, 0], sizes = [2, 1], strides = [1, 1]} : vector<8x1xf32> to vector<2x1xf32>
    %224 = arith.addf %222, %223 : vector<2x1xf32>
    %225 = vector.extract_strided_slice %221 {offsets = [4, 0], sizes = [2, 1], strides = [1, 1]} : vector<8x1xf32> to vector<2x1xf32>
    %226 = arith.addf %224, %225 : vector<2x1xf32>
    %227 = vector.extract_strided_slice %221 {offsets = [6, 0], sizes = [2, 1], strides = [1, 1]} : vector<8x1xf32> to vector<2x1xf32>
    %228 = arith.addf %226, %227 : vector<2x1xf32>
    %229 = tpu.concatenate %228, %228, %228, %228 in 0 : vector<2x1xf32>, vector<2x1xf32>, vector<2x1xf32>, vector<2x1xf32> -> vector<8x1xf32>
    %230 = arith.subf %229, %221 : vector<8x1xf32>
    %cst_55 = arith.constant 0.333333343 : f32
    %231 = vector.broadcast %cst_55 : f32 to vector<8x1xf32>
    %232 = arith.mulf %230, %231 : vector<8x1xf32>
    %233 = arith.subf %221, %232 : vector<8x1xf32>
    %cst_56 = arith.constant dense<0.000000e+00> : vector<1xf32>
    %234 = vector.multi_reduction <add>, %221, %cst_56 [0] : vector<8x1xf32> to vector<1xf32>
    %235 = vector.shape_cast %234 : vector<1xf32> to vector<1x1xf32>
    %cst_57 = arith.constant 8.000000e+00 : f32
    %236 = vector.broadcast %cst_57 : f32 to vector<1x1xf32>
    %237 = arith.divf %235, %236 : vector<1x1xf32>
    %238 = arith.mulf %233, %146 : vector<8x1xf32>
    %cst_58 = arith.constant dense<0.000000e+00> : vector<1xf32>
    %239 = vector.multi_reduction <add>, %238, %cst_58 [0] : vector<8x1xf32> to vector<1xf32>
    %240 = vector.shape_cast %239 : vector<1xf32> to vector<1x1xf32>
    %cst_59 = arith.constant 8.000000e+00 : f32
    %241 = vector.broadcast %cst_59 : f32 to vector<1x1xf32>
    %242 = arith.divf %240, %241 : vector<1x1xf32>
    %243 = tpu.concatenate %237, %242 in 1 : vector<1x1xf32>, vector<1x1xf32> -> vector<1x2xf32>
    %c0_60 = arith.constant 0 : index
    %c0_61 = arith.constant 0 : index
    %244 = vector.load %arg6[%c0_60, %c0_61] : memref<1x2xf32, #tpu.memory_space<vmem>>, vector<1x2xf32>
    tpu.vector_store %arg6[%c0_60, %c0_61], %243 {strides = array<i32>} : memref<1x2xf32, #tpu.memory_space<vmem>>, vector<1x2xf32>,
    return
  }
}

</mosaic_0001>

<bundles_post_ra>
// kernel: tpu_custom_call.1
= control target key start
LH: loop header
LB: loop body
LE: loop exit
PB: predicated region body
PF: predicated region fallthrough
CT: control target
= control target key end

     0   :  { %13 = vsyncpa [#allocation5], 0  ;;  %s1007_s0 = inlined_call_operand.<no memory space> [shape: s32[1], index: 0, kind: input, shape index: {}]   ;;  %s1008_s1 = inlined_call_operand.vmem [shape: s32[8], index: 1, kind: input, shape index: {}]   ;;  %s1009_s2 = inlined_call_operand.vmem [shape: bf16[8,256], index: 2, kind: input, shape index: {}]   ;;  %s1010_s3 = inlined_call_operand.vmem [shape: bf16[256,8], index: 3, kind: input, shape index: {}]   ;;  %s1011_s4 = inlined_call_operand.vmem [shape: f32[1,8], index: 4, kind: input, shape index: {}]   ;;  %s1012_s5 = inlined_call_operand.hbm [shape: f32[8,8], index: 5, kind: output, shape index: {0}]   ;;  %s1013_s6 = inlined_call_operand.hbm [shape: f32[1,2], index: 6, kind: output, shape index: {1}]  }
   0x1   :  { %14 = vsyncpa [#allocation4], 0 }
   0x2   :  { %15 = vsyncpa [#allocation8], 0  ;;  %s24_s23 = sshll.u32 %s1008_s1, 4  ;;  %s25_s23 = int_to_ptr.vmem [resolvable:$true] %s24_s23 }
   0x3   :  { %s718_s24 = scalar_lea.vmem %s25_s23, 16  ;;  %p723_p1 = scmp.lt.s32.totalorder %s25_s23, %s25_s23 }
   0x4   :  { %p719_p0 = scmp.ne.s32.totalorder %s25_s23, %s718_s24  ;;  %p724_p2 = scmp.lt.s32.totalorder %s718_s24, %s718_s24 }
   0x6   :  { %p725_p3 = por %p724_p2, %p723_p1 }
   0x8   :  { %p726_p4 = pnand %p725_p3, %p719_p0 }
   0xa   :  { %729 = shalt.err (!%p726_p4)
}
   0xb   :  { %s776_s25 = smov [#allocation3]  }
   0xc   :  { %27 = dma.vmem_to_smem %s25_s23, 16, %s776_s25, [#allocation5]  }
   0xd   :  { %770 = dma.done.wait [#allocation5], 16  }
   0xe   :  { %771 = vsyncadd [#allocation5], 4294967280 }
   0xf   :  { %37 = sfence }
  0x10   :  { %v678_v0 = vld [vmem:[%s1010_s3 + $0x78] sm:$0xff]   ;;  %v680_v2 = vld [vmem:[%s1010_s3 + $0x70] sm:$0xff]   ;;  %v682_v4 = vld [vmem:[%s1010_s3 + $0x68] sm:$0xff]   ;;  %vm222_vm0 = vcmask 64512   ;;  %v238_v32 = vlaneseq  ;;  %v258_v46 = vstv %s1007_s0  ;;  %vm355_vm1 = vcmask 1041408   ;;  %s935_s0 = sld [smem:[#allocation3]] }
  0x11   :  { %v679_v1 = vld [vmem:[%s1010_s3 + $0x38] sm:$0xff]   ;;  %651 = vmatprep.subr.bf16.mxu0 %v678_v0  ;;  %v681_v3 = vld [vmem:[%s1010_s3 + $0x30] sm:$0xff]   ;;  %v683_v5 = vld [vmem:[%s1010_s3 + $0x28] sm:$0xff]   ;;  %vm357_vm2 = vcmask 1043456   ;;  %vm359_vm3 = vcmask 1045504   ;;  %s937_s11 = sld [smem:[#allocation3 + $0x1]] }
  0x12   :  { %652 = vmatpush3.bf16.msra.mxu0 %v679_v1  ;;  %v684_v6 = vld [vmem:[%s1010_s3 + $0x60] sm:$0xff]   ;;  %v686_v8 = vld [vmem:[%s1010_s3 + $0x58] sm:$0xff]   ;;  %v688_v10 = vld [vmem:[%s1010_s3 + $0x50] sm:$0xff]   ;;  %v881_v33 = vshrl.u32 %v238_v32, 7  ;;  %v884_v35 = vand.u32 127, %v238_v32  ;;  %s939_s12 = sld [smem:[#allocation3 + $0x2]] }
  0x13   :  { %653 = vmatprep.subr.bf16.mxu0 %v680_v2  ;;  %v685_v7 = vld [vmem:[%s1010_s3 + $0x20] sm:$0xff]   ;;  %v687_v9 = vld [vmem:[%s1010_s3 + $0x18] sm:$0xff]   ;;  %v689_v13 = vld [vmem:[%s1010_s3 + $0x10] sm:$0xff]   ;;  %s941_s13 = sld [smem:[#allocation3 + $0x3]]  ;;  %s778_s18 = smov [#allocation6]  }
  0x14   :  { %v39_v11 = vld [vmem:[%s1009_s2] sm:$0xff]  ;;  %v690_v14 = vld [vmem:[%s1010_s3 + $0x48] sm:$0xff]   ;;  %v241_v34 = vadd.s32 16, %v881_v33  ;;  %v240_v37 = vadd.s32 8, %v881_v33  ;;  %v245_v38 = vmul.u32 8, %v881_v33  ;;  %v242_v39 = vadd.s32 24, %v881_v33 }
  0x15   :  { %v611_v12 = vcombine.high %v39_v11, %v39_v11  ;;  %v691_v15 = vld [vmem:[%s1010_s3 + $0x8] sm:$0xff]   ;;  %v692_v16 = vld [vmem:[%s1010_s3 + $0x40] sm:$0xff]   ;;  %v610_v18 = vcombine.low %v39_v11, %v39_v11  ;;  %s943_s14 = sld [smem:[#allocation3 + $0x4]]  ;;  %s586_s19 = sshll.u32 %s778_s18, 4  ;;  %s587_s19 = int_to_ptr.vmem [resolvable:$true] %s586_s19 }
  0x16   :  { %654 = vmatpush3.bf16.msra.mxu0 %v681_v3  ;;  %v693_v17 = vld [vmem:[%s1010_s3] sm:$0xff]   ;;  %v247_v36 = vmul.u32 8, %v241_v34  ;;  %v246_v41 = vmul.u32 8, %v240_v37  ;;  %v249_v42 = vadd.s32 %v245_v38, %v884_v35  ;;  %s946_s15 = sld [smem:[#allocation3 + $0x5]]  ;;  %s730_s20 = scalar_lea.vmem %s587_s19, 128 }
  0x17   :  { %655 = vmatprep.subr.bf16.mxu0 %v682_v4  ;;  %214 = vmatprep.mubr.bf16.mxu0 %v611_v12  ;;  %v609_v21 = vld [vmem:[%s1011_s4] ss:$0 sm:$0xff]  ;;  %v248_v43 = vmul.u32 8, %v242_v39  ;;  %s949_s16 = sld [smem:[#allocation3 + $0x6]]  ;;  %p731_p5 = scmp.ne.s32.totalorder %s587_s19, %s730_s20 }
  0x18   :  { %v251_v40 = vadd.s32 %v247_v36, %v884_v35  ;;  %v250_v45 = vadd.s32 %v246_v41, %v884_v35  ;;  %v253_v47 = vmul.u32 2654435769, %v249_v42  ;;  %s952_s17 = sld [smem:[#allocation3 + $0x7]]  ;;  %p735_p6 = scmp.lt.s32.totalorder %s587_s19, %s587_s19 }
  0x19   :  { %v252_v48 = vadd.s32 %v248_v43, %v884_v35  ;;  %p736_p7 = scmp.lt.s32.totalorder %s730_s20, %s730_s20 }
  0x1a   :  { %656 = vmatpush3.bf16.msra.mxu0 %v683_v5  ;;  %v255_v44 = vmul.u32 2654435769, %v251_v40  ;;  %v254_v50 = vmul.u32 2654435769, %v250_v45  ;;  %v259_v51 = vadd.s32 %v258_v46, %v253_v47 }
  0x1b   :  { %657 = vmatprep.subr.bf16.mxu0 %v684_v6  ;;  %v256_v52 = vmul.u32 2654435769, %v252_v48  ;;  %p737_p8 = por %p736_p7, %p735_p6 }
  0x1c   :  { %v261_v49 = vadd.s32 %v258_v46, %v255_v44  ;;  %v260_v54 = vadd.s32 %v258_v46, %v254_v50  ;;  %v628_v55 = vshrl.u32 %v259_v51, 16 }
  0x1d   :  { %v262_v56 = vadd.s32 %v258_v46, %v256_v52  ;;  %p738_p9 = pnand %p737_p8, %p731_p5 }
  0x1e   :  { %658 = vmatpush3.bf16.msra.mxu0 %v685_v7  ;;  %v630_v53 = vshrl.u32 %v261_v49, 16  ;;  %v629_v58 = vshrl.u32 %v260_v54, 16  ;;  %v271_v59 = vxor.u32 %v628_v55, %v259_v51 }
  0x1f   :  { %659 = vmatprep.subr.bf16.mxu0 %v686_v8  ;;  %v631_v60 = vshrl.u32 %v262_v56, 16 }
  0x20   :  { %v273_v57 = vxor.u32 %v630_v53, %v261_v49  ;;  %v272_v62 = vxor.u32 %v629_v58, %v260_v54  ;;  %v275_v63 = vmul.u32 2146121005, %v271_v59 }
  0x21   :  { %v274_v0 = vxor.u32 %v631_v60, %v262_v56 }
  0x22   :  { %660 = vmatpush3.bf16.msra.mxu0 %v687_v9  ;;  %v277_v61 = vmul.u32 2146121005, %v273_v57  ;;  %v276_v2 = vmul.u32 2146121005, %v272_v62  ;;  %v632_v3 = vshrl.u32 %v275_v63, 15 }
  0x23   :  { %661 = vmatprep.subr.bf16.mxu0 %v688_v10  ;;  %v278_v4 = vmul.u32 2146121005, %v274_v0 }
  0x24   :  { %v634_v1 = vshrl.u32 %v277_v61, 15  ;;  %v633_v6 = vshrl.u32 %v276_v2, 15  ;;  %v287_v7 = vxor.u32 %v632_v3, %v275_v63 }
  0x25   :  { %v635_v8 = vshrl.u32 %v278_v4, 15 }
  0x26   :  { %662 = vmatpush3.bf16.msra.mxu0 %v689_v13  ;;  %v289_v5 = vxor.u32 %v634_v1, %v277_v61  ;;  %v288_v10 = vxor.u32 %v633_v6, %v276_v2  ;;  %v291_v11 = vmul.u32 2221713035, %v287_v7 }
  0x27   :  { %663 = vmatprep.subr.bf16.mxu0 %v690_v14  ;;  %v290_v12 = vxor.u32 %v635_v8, %v278_v4 }
  0x28   :  { %v293_v9 = vmul.u32 2221713035, %v289_v5  ;;  %v292_v14 = vmul.u32 2221713035, %v288_v10 }
  0x2a   :  { %664 = vmatpush3.bf16.msra.mxu0 %v691_v15  ;;  %v638_v13 = vshrl.u32 %v293_v9, 16  ;;  %v636_v15 = vshrl.u32 %v291_v11, 16 }
  0x2b   :  { %665 = vmatprep.subr.bf16.mxu0 %v692_v16  ;;  %v294_v16 = vmul.u32 2221713035, %v290_v12 }
  0x2e   :  { %666 = vmatpush3.bf16.msra.mxu0 %v693_v17  ;;  %v305_v17 = vxor.u32 %v638_v13, %v293_v9 }
  0x31   :  { %215 = vmatmul.mubr.bf16.vlgmr.msra.gmra.mxu0 %v610_v18  ;;  %v637_v18 = vshrl.u32 %v292_v14, 16 }
  0xf1   :  { %v667_v19 = vpop.f32.mrf.mxu0 }
  0xf3   :  { %v668_v20 = vpop.f32.mrf.mxu0 }
  0xf4   :  { %v669_v22 = vadd.f32 %v668_v20, %v667_v19  ;;  %v303_v19 = vxor.u32 %v636_v15, %v291_v11  ;;  %v639_v20 = vshrl.u32 %v294_v16, 16 }
  0xf5   :  { %v670_v23 = vpop.f32.mrf.mxu0 }
  0xf6   :  { %v217_v24 = vadd.f32 %v669_v22, %v609_v21  ;;  %v309_v21 = vand.u32 8388607, %v305_v17  ;;  %v304_v22 = vxor.u32 %v637_v18, %v292_v14  ;;  %v307_v23 = vand.u32 8388607, %v303_v19 }
  0xf7   :  { %v671_v25 = vpop.f32.mrf.mxu0 }
  0xf8   :  { %v223_v26 = vsel %vm222_vm0, %v217_v24, -inf  ;;  %v313_v25 = vcvt.s32.f32 %v309_v21 }
  0xf9   :  { %224 = vmax.xlane.f32.xlu0 %v223_v26  ;;  %v308_v26 = vand.u32 8388607, %v304_v22 }
  0xfb   :  { %v312_v32 = vcvt.s32.f32 %v308_v26 }
  0xfd   :  { %v316_v38 = vadd.f32 0.5, %v312_v32 }
  0xff   :  { %v320_v41 = vmul.f32 1.1920929e-07, %v316_v38 }
 0x182   :  { %v225_v27 = vpop.xlane.xlu0 %224 }
 0x183   :  { %v874_v28 = vsub.f32 %v217_v24, %v225_v27  ;;  %v306_v24 = vxor.u32 %v639_v20, %v294_v16  ;;  %v311_v27 = vcvt.s32.f32 %v307_v23 }
 0x185   :  { %v227_v29 = vmul.f32 1.442695, %v874_v28  ;;  %v315_v34 = vadd.f32 0.5, %v311_v27 }
 0x187   :  { %696 = vpow2.f32 %v227_v29  ;;  %v310_v29 = vand.u32 8388607, %v306_v24  ;;  %v319_v39 = vmul.f32 1.1920929e-07, %v315_v34 }
 0x189   :  { %v314_v36 = vcvt.s32.f32 %v310_v29 }
 0x18b   :  { %v318_v40 = vadd.f32 0.5, %v314_v36 }
 0x18d   :  { %v322_v42 = vmul.f32 1.1920929e-07, %v318_v40 }
 0x194   :  { %v877_v30 = vpop.eup %696 }
 0x195   :  { %v229_v31 = vsel %vm222_vm0, %v877_v30, 0.0 }
 0x196   :  { %230 = vadd.xlane.f32.xlu0 %v229_v31  ;;  %v317_v31 = vadd.f32 0.5, %v313_v25 }
 0x198   :  { %v321_v37 = vmul.f32 1.1920929e-07, %v317_v31 }
 0x19a   :  { %698 = vlog2.f32 %v321_v37 }
 0x19b   :  { %700 = vlog2.f32 %v319_v39 }
 0x19c   :  { %702 = vlog2.f32 %v320_v41 }
 0x19d   :  { %704 = vlog2.f32 %v322_v42 }
 0x1a7   :  { %v699_v43 = vpop.eup %698 }
 0x1a8   :  { %v701_v44 = vpop.eup %700  ;;  %v328_v45 = vmul.f32 0.6931472, %v699_v43 }
 0x1a9   :  { %v703_v46 = vpop.eup %702  ;;  %v324_v47 = vmul.f32 0.6931472, %v701_v44 }
 0x1aa   :  { %v705_v48 = vpop.eup %704  ;;  %v333_v49 = vsub.f32 0.0, %v328_v45  ;;  %v326_v50 = vmul.f32 0.6931472, %v703_v46 }
 0x1ab   :  { %v331_v51 = vsub.f32 0.0, %v324_v47  ;;  %v330_v52 = vmul.f32 0.6931472, %v705_v48 }
 0x1ac   :  { %706 = vlog2.f32 %v333_v49  ;;  %v332_v53 = vsub.f32 0.0, %v326_v50 }
 0x1ad   :  { %708 = vlog2.f32 %v331_v51  ;;  %v334_v55 = vsub.f32 0.0, %v330_v52 }
 0x1b9   :  { %v707_v56 = vpop.eup %706 }
 0x1ba   :  { %v709_v57 = vpop.eup %708  ;;  %v340_v63 = vmul.f32 0.6931472, %v707_v56 }
 0x1bb   :  { %v336_v0 = vmul.f32 0.6931472, %v709_v57 }
 0x1bc   :  { %v345_v7 = vsub.f32 0.0, %v340_v63 }
 0x1bd   :  { %v343_v8 = vsub.f32 0.0, %v336_v0 }
 0x21f   :  { %v231_v54 = vpop.xlane.xlu0 %230 }
 0x220   :  { %710 = vrcp.f32 %v231_v54 }
 0x221   :  { %712 = vlog2.f32 %v231_v54 }
 0x222   :  { %714 = vlog2.f32 %v332_v53 }
 0x223   :  { %716 = vlog2.f32 %v334_v55 }
 0x22d   :  { %v711_v58 = vpop.eup %710 }
 0x22e   :  { %v713_v59 = vpop.eup %712  ;;  %v233_v60 = vmul.f32 %v711_v58, %v877_v30 }
 0x22f   :  { %v715_v61 = vpop.eup %714  ;;  %v236_v62 = vmul.f32 0.6931472, %v713_v59 }
 0x230   :  { %234 = vst.msk [vmem:[#allocation6] sm:$0xff] %vm222_vm0, %v233_v60  ;;  %v717_v1 = vpop.eup %716  ;;  %v338_v3 = vmul.f32 0.6931472, %v715_v61 }
 0x231   :  { %v237_v2 = vsub.f32 %v874_v28, %v236_v62  ;;  %v342_v9 = vmul.f32 0.6931472, %v717_v1 }
 0x232   :  { %v344_v14 = vsub.f32 0.0, %v338_v3 }
 0x233   :  { %v349_v4 = vrot.slane %v237_v2, 6  ;;  %v351_v5 = vrot.slane %v237_v2, 4  ;;  %v353_v6 = vrot.slane %v237_v2, 2  ;;  %v346_v25 = vsub.f32 0.0, %v342_v9 }
 0x235   :  { %v419_v30 = vsel %vm355_vm1, %v351_v5, %v353_v6  ;;  %v356_v10 = vsel %vm355_vm1, %v237_v2, %v349_v4  ;;  %v388_v11 = vsel %vm355_vm1, %v353_v6, %v237_v2  ;;  %v450_v12 = vsel %vm355_vm1, %v349_v4, %v351_v5 }
 0x236   :  { %v420_v28 = vsel %vm357_vm2, %v419_v30, %v237_v2  ;;  %v358_v13 = vsel %vm357_vm2, %v356_v10, %v351_v5  ;;  %v389_v15 = vsel %vm357_vm2, %v388_v11, %v349_v4  ;;  %v451_v21 = vsel %vm357_vm2, %v450_v12, %v353_v6 }
 0x237   :  { %v907_v16 = vsel %vm359_vm3, %v420_v28, %v349_v4  ;;  %v910_v17 = vsel %vm359_vm3, %v358_v13, %v353_v6  ;;  %v913_v18 = vsel %vm359_vm3, %v389_v15, %v351_v5  ;;  %v922_v26 = vsel %vm359_vm3, %v451_v21, %v237_v2 }
 0x238   :  { %v422_v19 = vadd.f32 %v907_v16, %v345_v7  ;;  %v361_v20 = vadd.f32 %v910_v17, %v343_v8  ;;  %v391_v24 = vadd.f32 %v913_v18, %v344_v14  ;;  %v453_v29 = vadd.f32 %v922_v26, %v346_v25 }
 0x239   :  { %v347_v15 = vand.u32 1, %v881_v33 }
 0x23a   :  { %v423_v22 = vsel %vm222_vm0, %v422_v19, -inf  ;;  %v362_v23 = vsel %vm222_vm0, %v361_v20, -inf  ;;  %v392_v27 = vsel %vm222_vm0, %v391_v24, -inf  ;;  %v454_v31 = vsel %vm222_vm0, %v453_v29, -inf }
 0x23b   :  { %424 = vmax.xlane.f32.xlu0 %v423_v22  ;;  %363 = vmax.xlane.f32.xlu1 %v362_v23  ;;  %vm955_vm13 = vcmp.eq.s32.totalorder %v347_v15, 0  ;;  %vm960_vm14 = vcmp.eq.s32.totalorder %v347_v15, 1 }
 0x23f   :  { %393 = vmax.xlane.f32.xlu1 %v392_v27 }
 0x243   :  { %455 = vmax.xlane.f32.xlu1 %v454_v31 }
 0x2c4   :  { %v425_v32 = vpop.xlane.xlu0 %424  ;;  %v364_v34 = vpop.xlane.xlu1 %363 }
 0x2c5   :  { %vm426_vm4 = vcmp.ge.f32.partialorder %v422_v19, %v425_v32  ;;  %vm365_vm5 = vcmp.ge.f32.partialorder %v361_v20, %v364_v34 }
 0x2c6   :  { %v427_v36 = vsel %vm426_vm4, %v884_v35, 8  ;;  %v366_v37 = vsel %vm365_vm5, %v884_v35, 8 }
 0x2c7   :  { %v428_v38 = vsel %vm222_vm0, %v427_v36, 2147483647  ;;  %v367_v39 = vsel %vm222_vm0, %v366_v37, 2147483647  ;;  %v510_v37 = vstv %s939_s12 }
 0x2c8   :  { %v394_v40 = vpop.xlane.xlu1 %393  ;;  %v369_v41 = vshra.s32 %v367_v39, 16  ;;  %v430_v44 = vshra.s32 %v428_v38, 16  ;;  %v368_v54 = vand.u32 65535, %v367_v39  ;;  %v429_v57 = vand.u32 65535, %v428_v38 }
 0x2c9   :  { %vm395_vm6 = vcmp.ge.f32.partialorder %v391_v24, %v394_v40  ;;  %v522_v38 = vstv %s941_s13 }
 0x2ca   :  { %v396_v42 = vsel %vm395_vm6, %v884_v35, 8  ;;  %v371_v43 = vcvt.s32.f32 %v369_v41  ;;  %v432_v49 = vcvt.s32.f32 %v430_v44  ;;  %v370_v56 = vcvt.s32.f32 %v368_v54 }
 0x2cb   :  { %v397_v45 = vsel %vm222_vm0, %v396_v42, 2147483647  ;;  %v431_v62 = vcvt.s32.f32 %v429_v57 }
 0x2cc   :  { %372 = vmin.xlane.f32.xlu0 %v371_v43  ;;  %v456_v46 = vpop.xlane.xlu1 %455  ;;  %v399_v47 = vshra.s32 %v397_v45, 16  ;;  %v398_v58 = vand.u32 65535, %v397_v45 }
 0x2cd   :  { %vm457_vm7 = vcmp.ge.f32.partialorder %v453_v29, %v456_v46  ;;  %v485_v29 = vstv %s935_s0  ;;  %v489_v46 = vstv %s943_s14 }
 0x2ce   :  { %v458_v48 = vsel %vm457_vm7, %v884_v35, 8  ;;  %v401_v50 = vcvt.s32.f32 %v399_v47  ;;  %v400_v63 = vcvt.s32.f32 %v398_v58  ;;  %v486_v45 = vsel %vm955_vm13, %v485_v29, 0 }
 0x2cf   :  { %v459_v51 = vsel %vm222_vm0, %v458_v48, 2147483647  ;;  %v501_v48 = vstv %s946_s15  ;;  %v490_v57 = vsel %vm960_vm14, %v489_v46, %v486_v45 }
 0x2d0   :  { %433 = vmin.xlane.f32.xlu0 %v432_v49  ;;  %402 = vmin.xlane.f32.xlu1 %v401_v50  ;;  %v461_v52 = vshra.s32 %v459_v51, 16  ;;  %v460_v0 = vand.u32 65535, %v459_v51  ;;  %v525_v51 = vstv %s952_s17 }
 0x2d2   :  { %v463_v53 = vcvt.s32.f32 %v461_v52  ;;  %v462_v4 = vcvt.s32.f32 %v460_v0  ;;  %v777_v0 = vmov 0.0  }
 0x2d4   :  { %464 = vmin.xlane.f32.xlu1 %v463_v53 }
 0x355   :  { %v373_v55 = vpop.xlane.xlu0 %372 }
 0x356   :  { %vm374_vm8 = vcmp.eq.f32.partialorder %v371_v43, %v373_v55  ;;  %v379_v6 = vcvt.f32.s32 %v373_v55 }
 0x357   :  { %v375_v59 = vsel %vm374_vm8, %v370_v56, inf }
 0x358   :  { %376 = vmin.xlane.f32.xlu0 %v375_v59  ;;  %v380_v9 = vshll.u32 %v379_v6, 16 }
 0x359   :  { %v434_v60 = vpop.xlane.xlu0 %433  ;;  %v403_v61 = vpop.xlane.xlu1 %402 }
 0x35a   :  { %vm435_vm9 = vcmp.eq.f32.partialorder %v432_v49, %v434_v60  ;;  %vm404_vm10 = vcmp.eq.f32.partialorder %v401_v50, %v403_v61  ;;  %v440_v7 = vcvt.f32.s32 %v434_v60  ;;  %v409_v30 = vcvt.f32.s32 %v403_v61 }
 0x35b   :  { %v436_v1 = vsel %vm435_vm9, %v431_v62, inf  ;;  %v405_v2 = vsel %vm404_vm10, %v400_v63, inf  ;;  %v523_v50 = vsel %vm955_vm13, %v522_v38, 0 }
 0x35c   :  { %437 = vmin.xlane.f32.xlu0 %v436_v1  ;;  %406 = vmin.xlane.f32.xlu1 %v405_v2  ;;  %v441_v28 = vshll.u32 %v440_v7, 16  ;;  %v410_v19 = vshll.u32 %v409_v30, 16 }
 0x35d   :  { %v465_v3 = vpop.xlane.xlu1 %464 }
 0x35e   :  { %vm466_vm11 = vcmp.eq.f32.partialorder %v463_v53, %v465_v3  ;;  %v471_v11 = vcvt.f32.s32 %v465_v3 }
 0x35f   :  { %v467_v5 = vsel %vm466_vm11, %v462_v4, inf }
 0x360   :  { %468 = vmin.xlane.f32.xlu1 %v467_v5  ;;  %v472_v23 = vshll.u32 %v471_v11, 16 }
 0x3e1   :  { %v377_v8 = vpop.xlane.xlu0 %376 }
 0x3e2   :  { %v378_v10 = vcvt.f32.s32 %v377_v8 }
 0x3e4   :  { %v381_v12 = vadd.s32 %v380_v9, %v378_v10 }
 0x3e5   :  { %v438_v13 = vpop.xlane.xlu0 %437  ;;  %v407_v14 = vpop.xlane.xlu1 %406 }
 0x3e6   :  { %v439_v20 = vcvt.f32.s32 %v438_v13  ;;  %v408_v21 = vcvt.f32.s32 %v407_v14  ;;  %vm382_vm12 = vcmp.eq.s32.totalorder %v884_v35, %v381_v12 }
 0x3e7   :  { %v383_v22 = vsel %vm382_vm12, %v910_v17, 0.0  ;;  %v498_v17 = vstv %s937_s11 }
 0x3e8   :  { %v442_v24 = vadd.s32 %v441_v28, %v439_v20  ;;  %v411_v25 = vadd.s32 %v410_v19, %v408_v21  ;;  %v384_v33 = vsel %vm222_vm0, %v383_v22, 0.0  ;;  %v499_v47 = vsel %vm955_vm13, %v498_v17, 0 }
 0x3e9   :  { %385 = vadd.xlane.f32.xlu0 %v384_v33  ;;  %v469_v32 = vpop.xlane.xlu1 %468  ;;  %v502_v58 = vsel %vm960_vm14, %v501_v48, %v499_v47 }
 0x3ea   :  { %v412_v34 = vadd.s32 %v411_v25, %v381_v12  ;;  %v470_v36 = vcvt.f32.s32 %v469_v32  ;;  %vm444_vm15 = vcmp.eq.s32.totalorder %v884_v35, %v442_v24  ;;  %vm413_vm4 = vcmp.eq.s32.totalorder %v884_v35, %v411_v25 }
 0x3eb   :  { %v445_v39 = vsel %vm444_vm15, %v907_v16, 0.0  ;;  %v414_v40 = vsel %vm413_vm4, %v913_v18, 0.0  ;;  %v511_v16 = vsel %vm955_vm13, %v510_v37, 0  ;;  %v513_v18 = vstv %s949_s16 }
 0x3ec   :  { %v443_v41 = vadd.s32 %v442_v24, %v412_v34  ;;  %v473_v42 = vadd.s32 %v472_v23, %v470_v36  ;;  %v446_v43 = vsel %vm222_vm0, %v445_v39, 0.0  ;;  %v415_v44 = vsel %vm222_vm0, %v414_v40, 0.0 }
 0x3ed   :  { %447 = vadd.xlane.f32.xlu0 %v446_v43  ;;  %416 = vadd.xlane.f32.xlu1 %v415_v44  ;;  %v514_v59 = vsel %vm960_vm14, %v513_v18, %v511_v16 }
 0x3ee   :  { %v474_v49 = vadd.s32 %v473_v42, %v443_v41  ;;  %vm475_vm5 = vcmp.eq.s32.totalorder %v884_v35, %v473_v42 }
 0x3ef   :  { %v476_v52 = vsel %vm475_vm5, %v922_v26, 0.0  ;;  %v526_v26 = vsel %vm960_vm14, %v525_v51, %v523_v50 }
 0x3f0   :  { %v481_v53 = vadd.s32 %v474_v49, %v381_v12  ;;  %v495_v54 = vadd.s32 %v474_v49, %v411_v25  ;;  %v507_v55 = vadd.s32 %v474_v49, %v442_v24  ;;  %v519_v56 = vadd.s32 %v474_v49, %v473_v42 }
 0x3f1   :  { %v477_v35 = vsel %vm222_vm0, %v476_v52, 0.0  ;;  %vm564_vm0 = vcmask 7168  }
 0x3f2   :  { %v482_v60 = vand.u32 7, %v481_v53  ;;  %v496_v61 = vand.u32 7, %v495_v54  ;;  %v508_v62 = vand.u32 7, %v507_v55  ;;  %v520_v63 = vand.u32 7, %v519_v56  ;;  %478 = vadd.xlane.f32.xlu1 %v477_v35 }
 0x3f4   :  { %vm491_vm6 = vcmp.ne.s32.totalorder %v482_v60, %v490_v57  ;;  %vm503_vm7 = vcmp.ne.s32.totalorder %v496_v61, %v502_v58  ;;  %vm515_vm8 = vcmp.ne.s32.totalorder %v508_v62, %v514_v59  ;;  %vm527_vm9 = vcmp.ne.s32.totalorder %v520_v63, %v526_v26 }
 0x3f5   :  { %v641_v1 = vsel %vm491_vm6, 1.0, %v777_v0  ;;  %v644_v2 = vsel %vm503_vm7, 1.0, %v777_v0  ;;  %v647_v4 = vsel %vm515_vm8, 1.0, %v777_v0  ;;  %v650_v6 = vsel %vm527_vm9, 1.0, %v777_v0 }
 0x3f6   :  { %v506_v3 = vadd.f32 %v644_v2, %v641_v1 }
 0x3f8   :  { %v518_v5 = vadd.f32 %v647_v4, %v506_v3 }
 0x3fa   :  { %v530_v7 = vadd.f32 %v650_v6, %v518_v5 }
 0x3fc   :  { %v531_v8 = vmul.f32 0.25, %v530_v7 }
 0x3fe   :  { %v536_v9 = vrot.slane %v531_v8, 4  ;;  %v533_v10 = vrot.slane %v531_v8, 2  ;;  %v539_v28 = vrot.slane %v531_v8, 6 }
 0x400   :  { %v556_v30 = vadd.f32 %v536_v9, %v531_v8  ;;  %v535_v11 = vadd.f32 %v533_v10, %v531_v8 }
 0x402   :  { %v538_v12 = vadd.f32 %v536_v9, %v535_v11 }
 0x404   :  { %v541_v13 = vadd.f32 %v539_v28, %v538_v12 }
 0x406   :  { %v543_v14 = vrot.slane %v541_v13, 6  ;;  %v545_v15 = vrot.slane %v541_v13, 4  ;;  %v547_v21 = vrot.slane %v541_v13, 2 }
 0x408   :  { %v549_v19 = vsel %vm355_vm1, %v541_v13, %v543_v14 }
 0x409   :  { %v550_v20 = vsel %vm357_vm2, %v549_v19, %v545_v15 }
 0x40a   :  { %v551_v22 = vsel %vm359_vm3, %v550_v20, %v547_v21 }
 0x40b   :  { %v552_v24 = vsub.f32 %v551_v22, %v531_v8 }
 0x40d   :  { %v553_v29 = vmul.f32 0.33333334, %v552_v24 }
 0x40f   :  { %v554_v32 = vsub.f32 %v531_v8, %v553_v29 }
 0x472   :  { %v386_v23 = vpop.xlane.xlu0 %385 }
 0x476   :  { %v417_v25 = vpop.xlane.xlu1 %416  ;;  %v448_v27 = vpop.xlane.xlu0 %447 }
 0x477   :  { %v418_v33 = vadd.f32 %v417_v25, %v386_v23 }
 0x479   :  { %v449_v31 = vadd.f32 %v448_v27, %v418_v33 }
 0x47b   :  { %v479_v17 = vpop.xlane.xlu1 %478 }
 0x47c   :  { %v480_v34 = vadd.f32 %v479_v17, %v449_v31 }
 0x47e   :  { %v563_v36 = vmul.f32 %v554_v32, %v480_v34 }
 0x480   :  { %v565_v37 = vsel %vm564_vm0, %v563_v36, 0.0 }
 0x481   :  { %v566_v38 = vrot.slane %v565_v37, 4 }
 0x483   :  { %v567_v39 = vadd.f32 %v566_v38, %v565_v37 }
 0x484   :  { %741 = shalt.err (!%p738_p9)
}
 0x485   :  { %589 = dma.vmem_to_hbm [thread:$0]  %s587_s19, 128, %s1012_s5, [#allocation4]   ;;  %v568_v40 = vrot.slane %v567_v39, 2  ;;  %v557_v45 = vrot.slane %v556_v30, 2  ;;  %vm578_vm1 = vcmask 8192  }
 0x486   :  { %s779_s23 = smov 1   ;;  %s780_s24 = smov [#allocation7]  }
 0x487   :  { %v569_v41 = vadd.f32 %v568_v40, %v567_v39  ;;  %v558_v46 = vadd.f32 %v557_v45, %v556_v30  ;;  %s596_s25 = sshll.u32 %s780_s24, 4  ;;  %s597_s25 = int_to_ptr.vmem [resolvable:$true] %s596_s25 }
 0x488   :  { %s750_s5 = scalar_lea.vmem %s597_s25, 16  ;;  %s754_s26 = scalar_lea.vmem %s597_s25, 32 }
 0x489   :  { %v570_v42 = vrot.slane %v569_v41, 1  ;;  %v559_v47 = vrot.slane %v558_v46, 1  ;;  %p751_p10 = scmp.ne.s32.totalorder %s597_s25, %s750_s5  ;;  %p755_p11 = scmp.lt.s32.totalorder %s597_s25, %s597_s25 }
 0x48a   :  { %p756_p12 = scmp.lt.s32.totalorder %s754_s26, %s750_s5 }
 0x48b   :  { %v571_v43 = vadd.f32 %v570_v42, %v569_v41  ;;  %v560_v48 = vadd.f32 %v559_v47, %v558_v46 }
 0x48c   :  { %p757_p13 = por %p756_p12, %p755_p11 }
 0x48d   :  { %v572_v44 = vmul.f32 0.125, %v571_v43  ;;  %v562_v16 = vmul.f32 0.125, %v560_v48 }
 0x48e   :  { %p758_p0 = pnand %p757_p13, %p751_p10 }
 0x48f   :  { %574 = vrot.lane.b32.xlu0 %v572_v44, %s779_s23 }
 0x501   :  { %v575_v18 = vpop.permute.xlu0 %574 }
 0x502   :  { %v577_v49 = vsel %vm564_vm0, %v562_v16, %v575_v18 }
 0x503   :  { %579 = vst.msk [vmem:[#allocation7] sm:$0x1] %vm578_vm1, %v577_v49 }
 0x504   :  { %761 = shalt.err (!%p758_p0)
}
 0x505   :  { %599 = dma.vmem_to_hbm [thread:$0]  %s597_s25, 16, %s1013_s6, [#allocation8]  }
 0x506   :  { %772 = dma.done.wait [#allocation4], 128  }
 0x507   :  { %773 = vsyncadd [#allocation4], 4294967168 }
 0x508   :  { %774 = dma.done.wait [#allocation8], 16  }
 0x509   :  { %775 = vsyncadd [#allocation8], 4294967280 }
 0x50a   :  { %606 = vsyncpa [#allocation4], 1 }
 0x50b   :  { %607 = vsyncpa [#allocation8], 1 }
 0x50c   :  { %608 = vsyncpa [#allocation5], 1 }

</bundles_post_ra>
